<compile_context>
chip_gen: v7x
topology: tpu7x:2x2x1
jax: 0.10.0
libtpu: 0.0.40
codegen_flags: <defaults>
</compile_context>

<pallas_src>
import functools
import math

import jax
import jax.numpy as jnp
from jax import lax
from jax.experimental import pallas as pl
from jax.experimental.pallas import tpu as pltpu


def _ray_dirs_kernel(qscal_ref, yb_ref, ac_ref, bb_ref, u_ref, v_ref,
                     dirs_ref, *, y_step, eps):
    """Grid = (N, RP // Rb).

    qscal_ref : SMEM (2*N,) f32      -- [2b] = q_yy, [2b+1] = q_y
    yb_ref    : VMEM (Rb, L)  f32    -- y_cam pattern for grid-row block 0
    ac_ref    : VMEM (1, 1, L) f32   -- A_c(l)*x(l) + C_c(l)        (per batch)
    bb_ref    : VMEM (1, 1, L) f32   -- B_c(l)                      (per batch)
    u_ref     : VMEM (1, 1, L) f32   -- q_xx*x^2 + q_x*x + q_0      (per batch)
    v_ref     : VMEM (1, 1, L) f32   -- q_xy*x                      (per batch)
    dirs_ref  : VMEM (1, Rb, L)      -- normalized ray directions
    """
    b = pl.program_id(0)
    t = pl.program_id(1)

    q_yy = qscal_ref[2 * b]
    q_y = qscal_ref[2 * b + 1]

    y = yb_ref[...] + t.astype(jnp.float32) * y_step            # (Rb, L)
    ac = ac_ref[0]                                               # (1, L)
    bb = bb_ref[0]
    u = u_ref[0]
    v = v_ref[0]

    d = ac + bb * y                                              # un-normalized dirs
    s = (u + v * y) + y * (q_yy * y + q_y)                       # |d|^2 per pixel
    # == 1 / max(||d||, 1e-12) (torch F.normalize eps); rsqrt runs on the EUP
    inv_n = lax.rsqrt(jnp.maximum(s, eps))

    dirs_ref[0] = (d * inv_n).astype(dirs_ref.dtype)


def _pick_rows_per_block(rp, n_batch, px_per_row, target_pixels=262144):
    """Packed rows per grid block: divides rp, multiple of 8 when possible,
    ~256K pixels (~3 MiB f32 out block) per step.  For N == 1 keep >= 2 grid
    programs so a 2-TensorCore part (v7x) can split the grid; this costs at
    most one extra ~0.35us grid step on single-core parts."""
    target_rows = max(1, target_pixels // max(px_per_row, 1))
    if n_batch == 1 and rp >= 2:
        target_rows = min(target_rows, rp // 2)
    best = None
    r = 8
    while r <= min(target_rows, rp):
        if rp % r == 0:
            best = r
        r += 8
    if best is None:
        # TODO(synk): if rp < 8 (tiny images) and n_batch == 1 this leaves a
        # single grid program; splitting further would need a non-8-multiple
        # sublane block, which Mosaic's (8, 128) tiling rule disallows.
        best = rp
    return best


def ray_sampler(cam2world_matrix, intrinsics, ortho_scale, render_size):
    """Pallas implementation of RaySampler.forward.

    cam2world_matrix: (N, 4, 4), intrinsics: (N, 3, 3), ortho_scale unused.
    Returns (ray_origins (N, M, 3), ray_dirs (N, M, 3)), M = render_size**2.
    """
    del ortho_scale  # NOT USED (same as the reference module)
    dtype = cam2world_matrix.dtype
    N = cam2world_matrix.shape[0]
    rs = int(render_size)
    M = rs * rs
    C0 = 3 * rs

    # ---- lane-dense packing: k image rows per lane-row ---------------------
    k = 128 // math.gcd(C0, 128)
    if rs % k != 0:
        # TODO(synk): for render sizes where k does not divide rs the output
        # keeps the (rs, 3*rs) layout (still correct, just not lane-dense).
        k = 1
    L = k * C0                     # lanes per packed row (multiple of 128 if k>1)
    RP = rs // k                   # packed rows per image

    # ---- per-batch affine coefficients (O(N) glue, not the hot path) -------
    c2w32 = cam2world_matrix.astype(jnp.float32)
    intr32 = intrinsics.astype(jnp.float32)
    fx = intr32[:, 0, 0]
    fy = intr32[:, 1, 1]
    cx = intr32[:, 0, 2]
    cy = intr32[:, 1, 2]
    sk = intr32[:, 0, 1]
    cam_loc = cam2world_matrix[:, :3, 3]                          # (N, 3)

    ocv2bld = jnp.diag(jnp.array([1.0, -1.0, -1.0, 1.0], jnp.float32))
    R = jnp.einsum("nij,jk->nik", c2w32, ocv2bld)[:, :3, :3]      # (N, 3, 3)
    r0, r1, r2 = R[:, :, 0], R[:, :, 1], R[:, :, 2]               # (N, 3) each

    inv_fx = (1.0 / fx)[:, None]
    inv_fy = (1.0 / fy)[:, None]
    sk_fy = (sk / fy)[:, None]
    # ray_dir_c(x, y) = A_c*x + B_c*y + C_c  (translation column cancels cam_loc)
    A = r0 * inv_fx
    B = -r0 * sk_fy * inv_fx + r1 * inv_fy
    Cc = (r0 * (cy[:, None] * sk_fy - cx[:, None]) * inv_fx
          - r1 * cy[:, None] * inv_fy + r2)

    # |d|^2 = q_xx x^2 + q_yy y^2 + q_xy x y + q_x x + q_y y + q_0
    q_xx = jnp.sum(A * A, axis=1)
    q_yy = jnp.sum(B * B, axis=1)
    q_xy = 2.0 * jnp.sum(A * B, axis=1)
    q_x = 2.0 * jnp.sum(A * Cc, axis=1)
    q_y = 2.0 * jnp.sum(B * Cc, axis=1)
    q_0 = jnp.sum(Cc * Cc, axis=1)

    # ---- per-lane (channel-interleaved, x-folded) coefficient rows ---------
    lane = jnp.arange(L, dtype=jnp.int32)
    c_of_l = lane % 3                                             # channel id
    x_of_l = (((lane % C0) // 3).astype(jnp.float32) + 0.5) * (1.0 / rs)

    ac_rows = (A[:, c_of_l] * x_of_l[None, :] + Cc[:, c_of_l]).reshape(N, 1, L)
    b_rows = B[:, c_of_l].reshape(N, 1, L)
    u_rows = (q_xx[:, None] * (x_of_l * x_of_l)[None, :]
              + q_x[:, None] * x_of_l[None, :] + q_0[:, None]).reshape(N, 1, L)
    v_rows = (q_xy[:, None] * x_of_l[None, :]).reshape(N, 1, L)
    qscal = jnp.stack([q_yy, q_y], axis=1).reshape(2 * N)

    # ---- tiling & the block-invariant y pattern -----------------------------
    Rb = _pick_rows_per_block(RP, N, px_per_row=L // 3)
    grid = (N, RP // Rb)
    y_step = float(Rb * k) / float(rs)

    row_in = (jnp.arange(L, dtype=jnp.int32) // C0).astype(jnp.float32)
    p = jnp.arange(Rb, dtype=jnp.float32)
    yb_pat = (p[:, None] * float(k) + row_in[None, :] + 0.5) * (1.0 / rs)

    kernel = functools.partial(_ray_dirs_kernel, y_step=y_step, eps=1e-24)
    itemsize = jnp.dtype(dtype).itemsize
    cost = pl.CostEstimate(
        flops=int(12 * 3 * M * N),
        transcendentals=int(3 * M * N),
        bytes_accessed=int(N * RP * L * itemsize + Rb * L * 4 + 4 * N * L * 4 + 8 * N),
    )

    dirs_img = pl.pallas_call(
        kernel,
        out_shape=jax.ShapeDtypeStruct((N, RP, L), dtype),
        grid_spec=pltpu.PrefetchScalarGridSpec(
            num_scalar_prefetch=0,
            grid=grid,
            in_specs=[
                pl.BlockSpec(memory_space=pltpu.MemorySpace.SMEM),     # q_yy / q_y
                pl.BlockSpec((Rb, L), lambda b, t: (0, 0)),            # yb pattern
                pl.BlockSpec((1, 1, L), lambda b, t: (b, 0, 0)),       # AC rows
                pl.BlockSpec((1, 1, L), lambda b, t: (b, 0, 0)),       # B rows
                pl.BlockSpec((1, 1, L), lambda b, t: (b, 0, 0)),       # U rows
                pl.BlockSpec((1, 1, L), lambda b, t: (b, 0, 0)),       # V rows
            ],
            out_specs=pl.BlockSpec((1, Rb, L), lambda b, t: (b, t, 0)),
        ),
        compiler_params=pltpu.CompilerParams(
            dimension_semantics=("parallel", "parallel"),
            vmem_limit_bytes=32 * 1024 * 1024,
        ),
        cost_estimate=cost,
    )(qscal, yb_pat, ac_rows, b_rows, u_rows, v_rows)

    ray_dirs = dirs_img.reshape(N, M, 3)           # contiguous -> free reshape
    ray_origins = jnp.broadcast_to(cam_loc[:, None, :], (N, M, 3)).astype(dtype)
    return ray_origins, ray_dirs


# ---------------------------- pure-JAX reference ---------------------------
def ray_sampler_ref(cam2world_matrix, intrinsics, render_size):
    dtype = cam2world_matrix.dtype
    N = cam2world_matrix.shape[0]
    M = render_size ** 2
    cam_loc = cam2world_matrix[:, :3, 3]
    fx = intrinsics[:, 0, 0]
    fy = intrinsics[:, 1, 1]
    cx = intrinsics[:, 0, 2]
    cy = intrinsics[:, 1, 2]
    sk = intrinsics[:, 0, 1]

    gi, gj = jnp.meshgrid(
        jnp.arange(render_size, dtype=dtype),
        jnp.arange(render_size, dtype=dtype),
        indexing="ij",
    )
    uv = jnp.stack([gj, gi], axis=0).reshape(2, -1).T  # (M, 2): [:,0]=j, [:,1]=i
    uv = jnp.broadcast_to(uv[None], (N, M, 2))

    x_cam = uv[:, :, 0] * (1.0 / render_size) + 0.5 / render_size
    y_cam = uv[:, :, 1] * (1.0 / render_size) + 0.5 / render_size
    z_cam = jnp.ones((N, M), dtype=dtype)

    x_lift = (x_cam - cx[:, None] + cy[:, None] * sk[:, None] / fy[:, None]
              - sk[:, None] * y_cam / fy[:, None]) / fx[:, None] * z_cam
    y_lift = (y_cam - cy[:, None]) / fy[:, None] * z_cam
    cam_rel = jnp.stack([x_lift, y_lift, z_cam, jnp.ones_like(z_cam)], axis=-1)

    ocv2bld = jnp.diag(jnp.array([1.0, -1.0, -1.0, 1.0], dtype=dtype))
    c2w = jnp.einsum("nij,jk->nik", cam2world_matrix, ocv2bld)
    world = jnp.einsum("nij,nmj->nmi", c2w, cam_rel)[:, :, :3]

    dirs = world - cam_loc[:, None, :]
    nrm = jnp.sqrt(jnp.sum(dirs * dirs, axis=2, keepdims=True))
    dirs = dirs / jnp.maximum(nrm, 1e-12)
    origins = jnp.broadcast_to(cam_loc[:, None, :], (N, M, 3))
    return origins, dirs


if __name__ == "__main__":
    key = jax.random.PRNGKey(0)
    k1, k2, k3, k4 = jax.random.split(key, 4)

    N = 2
    render_size = 16  # M = 256

    # deterministic synthetic cameras: orthonormal rotation (via QR) + translation
    a = jax.random.normal(k1, (N, 3, 3), dtype=jnp.float32)
    rot, _ = jnp.linalg.qr(a)
    trans = 2.0 + jax.random.normal(k2, (N, 3), dtype=jnp.float32)
    top = jnp.concatenate([rot, trans[:, :, None]], axis=-1)          # (N, 3, 4)
    bottom = jnp.broadcast_to(
        jnp.array([[[0.0, 0.0, 0.0, 1.0]]], jnp.float32), (N, 1, 4)
    )
    cam2world = jnp.concatenate([top, bottom], axis=1)                # (N, 4, 4)

    fx = 1.0 + 0.1 * jax.random.uniform(k3, (N,))
    fy = 1.0 + 0.1 * jax.random.uniform(k4, (N,))
    intrinsics = jnp.zeros((N, 3, 3), jnp.float32)
    intrinsics = intrinsics.at[:, 0, 0].set(fx)
    intrinsics = intrinsics.at[:, 1, 1].set(fy)
    intrinsics = intrinsics.at[:, 0, 2].set(0.5)
    intrinsics = intrinsics.at[:, 1, 2].set(0.5)
    intrinsics = intrinsics.at[:, 0, 1].set(0.01)  # skew
    intrinsics = intrinsics.at[:, 2, 2].set(1.0)

    ortho_scale = 1.0  # unused, matches reference signature

    origins, dirs = ray_sampler(cam2world, intrinsics, ortho_scale, render_size)
    origins, dirs = jax.block_until_ready((origins, dirs))

    ref_o, ref_d = ray_sampler_ref(cam2world, intrinsics, render_size)
    assert origins.shape == (N, render_size ** 2, 3)
    assert dirs.shape == (N, render_size ** 2, 3)
    assert jnp.allclose(origins, ref_o, rtol=1e-5, atol=1e-5)
    assert jnp.allclose(dirs, ref_d, rtol=1e-5, atol=1e-5)

    print("KERNEL_OK")
</pallas_src>

<mosaic_0001>
module attributes {stable_mosaic.version = 11 : i64} {
  func.func @_ray_dirs_kernel(%arg0: i32, %arg1: i32, %arg2: memref<4xf32, #tpu.memory_space<smem>>, %arg3: memref<2x384xf32, #tpu.memory_space<vmem>>, %arg4: memref<1x1x384xf32, #tpu.memory_space<vmem>>, %arg5: memref<1x1x384xf32, #tpu.memory_space<vmem>>, %arg6: memref<1x1x384xf32, #tpu.memory_space<vmem>>, %arg7: memref<1x1x384xf32, #tpu.memory_space<vmem>>, %arg8: memref<1x2x384xf32, #tpu.memory_space<vmem>>) attributes {dimension_semantics = [#tpu.dimension_semantics<parallel>, #tpu.dimension_semantics<parallel>], iteration_bounds = array<i64: 2, 1>, scalar_prefetch = 0 : i64, scratch_operands = 0 : i64, tpu.core_type = #tpu.core_type<tc>, window_params = [{transform_indices = @transform_0, window_bounds = array<i64: 4>}, {pipeline_mode = #tpu.pipeline_mode<synchronous>, transform_indices = @transform_1, window_bounds = array<i64: 2, 384>}, {transform_indices = @transform_2, window_bounds = array<i64: 1, 1, 384>}, {transform_indices = @transform_3, window_bounds = array<i64: 1, 1, 384>}, {transform_indices = @transform_4, window_bounds = array<i64: 1, 1, 384>}, {transform_indices = @transform_5, window_bounds = array<i64: 1, 1, 384>}, {transform_indices = @transform_6, window_bounds = array<i64: 1, 2, 384>}]} {
    %c2_i32 = arith.constant 2 : i32
    %0 = arith.muli %c2_i32, %arg0 : i32
    %1 = arith.index_cast %0 : i32 to index
    %2 = memref.load %arg2[%1] : memref<4xf32, #tpu.memory_space<smem>>
    %c2_i32_0 = arith.constant 2 : i32
    %3 = arith.muli %c2_i32_0, %arg0 : i32
    %c1_i32 = arith.constant 1 : i32
    %4 = arith.addi %3, %c1_i32 : i32
    %5 = arith.index_cast %4 : i32 to index
    %6 = memref.load %arg2[%5] : memref<4xf32, #tpu.memory_space<smem>>
    %c0 = arith.constant 0 : index
    %c0_1 = arith.constant 0 : index
    %7 = vector.load %arg3[%c0, %c0_1] : memref<2x384xf32, #tpu.memory_space<vmem>>, vector<2x384xf32>
    %8 = arith.sitofp %arg1 : i32 to f32
    %cst = arith.constant 1.000000e+00 : f32
    %9 = arith.mulf %8, %cst : f32
    %10 = vector.broadcast %9 : f32 to vector<2x384xf32>
    %11 = arith.addf %7, %10 : vector<2x384xf32>
    %c0_2 = arith.constant 0 : index
    %c0_3 = arith.constant 0 : index
    %c0_4 = arith.constant 0 : index
    %12 = vector.load %arg4[%c0_2, %c0_3, %c0_4] : memref<1x1x384xf32, #tpu.memory_space<vmem>>, vector<1x1x384xf32>
    %13 = vector.shape_cast %12 : vector<1x1x384xf32> to vector<1x384xf32>
    %c0_5 = arith.constant 0 : index
    %c0_6 = arith.constant 0 : index
    %c0_7 = arith.constant 0 : index
    %14 = vector.load %arg5[%c0_5, %c0_6, %c0_7] : memref<1x1x384xf32, #tpu.memory_space<vmem>>, vector<1x1x384xf32>
    %15 = vector.shape_cast %14 : vector<1x1x384xf32> to vector<1x384xf32>
    %c0_8 = arith.constant 0 : index
    %c0_9 = arith.constant 0 : index
    %c0_10 = arith.constant 0 : index
    %16 = vector.load %arg6[%c0_8, %c0_9, %c0_10] : memref<1x1x384xf32, #tpu.memory_space<vmem>>, vector<1x1x384xf32>
    %17 = vector.shape_cast %16 : vector<1x1x384xf32> to vector<1x384xf32>
    %c0_11 = arith.constant 0 : index
    %c0_12 = arith.constant 0 : index
    %c0_13 = arith.constant 0 : index
    %18 = vector.load %arg7[%c0_11, %c0_12, %c0_13] : memref<1x1x384xf32, #tpu.memory_space<vmem>>, vector<1x1x384xf32>
    %19 = vector.shape_cast %18 : vector<1x1x384xf32> to vector<1x384xf32>
    %20 = vector.broadcast %15 : vector<1x384xf32> to vector<2x384xf32>
    %21 = arith.mulf %20, %11 : vector<2x384xf32>
    %22 = vector.broadcast %13 : vector<1x384xf32> to vector<2x384xf32>
    %23 = arith.addf %22, %21 : vector<2x384xf32>
    %24 = vector.broadcast %19 : vector<1x384xf32> to vector<2x384xf32>
    %25 = arith.mulf %24, %11 : vector<2x384xf32>
    %26 = vector.broadcast %17 : vector<1x384xf32> to vector<2x384xf32>
    %27 = arith.addf %26, %25 : vector<2x384xf32>
    %28 = vector.broadcast %2 : f32 to vector<2x384xf32>
    %29 = arith.mulf %28, %11 : vector<2x384xf32>
    %30 = vector.broadcast %6 : f32 to vector<2x384xf32>
    %31 = arith.addf %29, %30 : vector<2x384xf32>
    %32 = arith.mulf %11, %31 : vector<2x384xf32>
    %33 = arith.addf %27, %32 : vector<2x384xf32>
    %cst_14 = arith.constant 1.000000e-24 : f32
    %34 = vector.broadcast %cst_14 : f32 to vector<2x384xf32>
    %35 = arith.maximumf %33, %34 : vector<2x384xf32>
    %36 = math.rsqrt %35 : vector<2x384xf32>
    %37 = arith.mulf %23, %36 : vector<2x384xf32>
    %c0_15 = arith.constant 0 : index
    %c0_16 = arith.constant 0 : index
    %c0_17 = arith.constant 0 : index
    %38 = vector.load %arg8[%c0_15, %c0_16, %c0_17] : memref<1x2x384xf32, #tpu.memory_space<vmem>>, vector<1x2x384xf32>
    %39 = vector.shape_cast %38 : vector<1x2x384xf32> to vector<2x384xf32>
    %40 = vector.shape_cast %37 : vector<2x384xf32> to vector<1x2x384xf32>
    tpu.vector_store %arg8[%c0_15, %c0_16, %c0_17], %40 {strides = array<i32>} : memref<1x2x384xf32, #tpu.memory_space<vmem>>, vector<1x2x384xf32>,
    return
  }
  func.func @transform_0(%arg0: i32, %arg1: i32) -> i32 {
    %c0_i32 = arith.constant 0 : i32
    %c0_i32_0 = arith.constant 0 : i32
    return %c0_i32 : i32
  }
  func.func @transform_1(%arg0: i32, %arg1: i32) -> (i32, i32) {
    %c0_i32 = arith.constant 0 : i32
    %c0_i32_0 = arith.constant 0 : i32
    %c0_i32_1 = arith.constant 0 : i32
    return %c0_i32, %c0_i32_0 : i32, i32
  }
  func.func @transform_2(%arg0: i32, %arg1: i32) -> (i32, i32, i32) {
    %c0_i32 = arith.constant 0 : i32
    %c0_i32_0 = arith.constant 0 : i32
    %c0_i32_1 = arith.constant 0 : i32
    return %arg0, %c0_i32, %c0_i32_0 : i32, i32, i32
  }
  func.func @transform_3(%arg0: i32, %arg1: i32) -> (i32, i32, i32) {
    %c0_i32 = arith.constant 0 : i32
    %c0_i32_0 = arith.constant 0 : i32
    %c0_i32_1 = arith.constant 0 : i32
    return %arg0, %c0_i32, %c0_i32_0 : i32, i32, i32
  }
  func.func @transform_4(%arg0: i32, %arg1: i32) -> (i32, i32, i32) {
    %c0_i32 = arith.constant 0 : i32
    %c0_i32_0 = arith.constant 0 : i32
    %c0_i32_1 = arith.constant 0 : i32
    return %arg0, %c0_i32, %c0_i32_0 : i32, i32, i32
  }
  func.func @transform_5(%arg0: i32, %arg1: i32) -> (i32, i32, i32) {
    %c0_i32 = arith.constant 0 : i32
    %c0_i32_0 = arith.constant 0 : i32
    %c0_i32_1 = arith.constant 0 : i32
    return %arg0, %c0_i32, %c0_i32_0 : i32, i32, i32
  }
  func.func @transform_6(%arg0: i32, %arg1: i32) -> (i32, i32, i32) {
    %c0_i32 = arith.constant 0 : i32
    %c0_i32_0 = arith.constant 0 : i32
    return %arg0, %arg1, %c0_i32 : i32, i32, i32
  }
}

</mosaic_0001>

<bundles_post_ra>
// kernel: tpu_custom_call.1
= control target key start
LH: loop header
LB: loop body
LE: loop exit
PB: predicated region body
PF: predicated region fallthrough
CT: control target
= control target key end

     0   :  { %s1277_s0 = inlined_call_operand.hbm [shape: f32[4], index: 0, kind: input, shape index: {}]   ;;  %s1278_s1 = inlined_call_operand.hbm [shape: f32[2,384], index: 1, kind: input, shape index: {}]   ;;  %s1279_s2 = inlined_call_operand.vmem [shape: f32[2,1,384], index: 2, kind: input, shape index: {}]   ;;  %s1280_s3 = inlined_call_operand.hbm [shape: f32[2,1,384], index: 3, kind: input, shape index: {}]   ;;  %s1281_s4 = inlined_call_operand.vmem [shape: f32[2,1,384], index: 4, kind: input, shape index: {}]   ;;  %s1282_s5 = inlined_call_operand.vmem [shape: f32[2,1,384], index: 5, kind: input, shape index: {}]   ;;  %s1283_s6 = inlined_call_operand.hbm [shape: f32[2,2,384], index: 6, kind: output, shape index: {}]  }
   0x1   :  { %1290 = sst [smem:[#allocation15_spill]] %s1277_s0 }
   0x2   :  { %11 = vsyncpa [#allocation5], 0 }
   0x3   :  { %12 = vsyncpa [#allocation3], 0 }
   0x4   :  { %13 = vsyncpa [#allocation8], 0 }
   0x5   :  { %15 = vsyncpa [#allocation8 + $0x1], 0 }
   0x6   :  { %16 = vsyncpa [#allocation4], 0 }
   0x7   :  { %18 = vsyncpa [#allocation4 + $0x1], 0  ;;  %s996_s21 = smov 0   ;;  %s998_s22 = smov 0  }
   0x8   :  { %s1000_s23 = smov 0   ;;  %s1002_s24 = smov 0  }
   0x9   :  { %s1004_s25 = smov 0   ;;  %s1006_s26 = smov 0  }
   0xa LB: > { %s682_s27 = sadd.s32 4294967295, %s954_s26   ;;  %s683_s28 = sadd.s32 4294967294, %s954_s26   ;;  %s954_s26 = sphi %s1006_s26, %s24_s26   ;;  %s950_s25 = sphi %s1004_s25, %s1313_s25   ;;  %s946_s24 = sphi %s1002_s24, %s1312_s24   ;;  %s942_s23 = sphi %s1000_s23, %s1311_s23   ;;  %s938_s22 = sphi %s998_s22, %s1310_s22   ;;  %s934_s21 = sphi %s996_s21, %s1309_s21  }
   0xb   : > { %p124_p0 = scmp.ne.s32.totalorder %s938_s22, %s934_s21  ;;  %p1030_p1 = scmp.eq.s32.totalorder %s682_s27, 0 }
   0xc   : > { %p1034_p2 = scmp.eq.s32.totalorder %s682_s27, 1  ;;  %p208_p3 = scmp.eq.s32.totalorder %s683_s28, 1 }
   0xd   : > { %s1291_s29 = scalar_select %p1030_p1, 1, 0 }
   0xe   : > { %p1040_p4 = por %p1030_p1, %p124_p0  ;;  %p684_p5 = scmp.ge.s32.totalorder %s954_s26, 1 }
   0xf   : > { %p1045_p6 = por %p208_p3, %p124_p0  ;;  %p215_p7 = scmp.lt.s32.totalorder %s954_s26, 3 }
  0x10   : > { %s1293_s7 = scalar_select %p1040_p4, 1, 0 }
  0x11   : > { %s1294_s8 = scalar_select %p1045_p6, 1, 0 }
  0x12   : > { %p1050_p8 = pnand %p684_p5, %p215_p7  ;;  %s956_s10 = smov [#allocation6]  }
  0x13   : > { %1295 = sst [smem:[#allocation14_spill]] %s1294_s8  ;;  %s237_s11 = sshll.u32 %s956_s10, 4  ;;  %s1057_s11 = int_to_ptr.vmem [resolvable:$true] %s237_s11 }
  0x14   : > { %s1296_s9 = scalar_select %p1050_p8, 1, 0 }
  0x15   : > { %p714_p10 = pneg %p1050_p8  ;;  %s1284_s13 = sadd.s32 1, %s950_s25 }
  0x16   : > { %p1068_p12 = scmp.ge.s32.totalorder %s1284_s13, 2  ;;  %s1299_s0 = sld [smem:[#allocation15_spill]] }
  0x17   : > { %p1061_p11 = pnand %p714_p10, %p1030_p1 }
  0x19   : > { %p795_p0 = pneg %p1061_p11 }
  0x1c   : > { %s793_s17 = scalar_lea.hbm %s1299_s0, 16 }
  0x1d   : > { %p794_p13 = scmp.ne.s32.totalorder %s1299_s0, %s793_s17  ;;  %p800_p7 = scmp.lt.u32.totalorder %s793_s17, %s1299_s0 }
  0x1f   : > { %p796_p3 = pnand %p795_p0, %p794_p13 }
  0x21   : > { %p797_p5 = pneg %p796_p3 }
  0x23   : > { %p802_p10 = pnand %p800_p7, %p797_p5 }
  0x25   : > { %805 = shalt.err (!%p802_p10)
}
  0x26   : > { %s957_s28 = smov [#allocation2]   ;;  %s806_s19 = scalar_lea.hbm %s1278_s1, 96 }
  0x27   : > { %717 = dma.hbm_to_smem (!%p1061_p11), %s1299_s0, 16, %s957_s28, [#allocation5]  }
  0x28   : > { %p807_p13 = scmp.ne.s32.totalorder %s1278_s1, %s806_s19  ;;  %p813_p7 = scmp.lt.u32.totalorder %s806_s19, %s1278_s1 }
  0x2a   : > { %p809_p3 = pnand %p807_p13, %p795_p0 }
  0x2c   : > { %p810_p5 = pneg %p809_p3 }
  0x2e   : > { %p815_p10 = pnand %p813_p7, %p810_p5 }
  0x30   : > { %818 = shalt.err (!%p815_p10)
}
  0x31   : > { %s819_s27 = scalar_lea.vmem %s1057_s11, 96  ;;  %p827_p1 = scmp.lt.s32.totalorder %s1057_s11, %s1057_s11 }
  0x32   : > { %p820_p9 = scmp.ne.s32.totalorder %s1057_s11, %s819_s27  ;;  %p828_p13 = scmp.lt.s32.totalorder %s819_s27, %s819_s27 }
  0x34   : > { %p822_p6 = pnand %p820_p9, %p795_p0  ;;  %p829_p3 = por %p828_p13, %p827_p1 }
  0x36   : > { %p823_p4 = pneg %p822_p6 }
  0x38   : > { %p830_p8 = pnand %p829_p3, %p823_p4 }
  0x3a   : > { %833 = shalt.err (!%p830_p8)
}
  0x3b   : > { %720 = dma.hbm_to_vmem [thread:$0]  (!%p1061_p11), %s1278_s1, 96, %s1057_s11, [#allocation3]  }
  0x3c   : > { %s1300_s28 = sadd.s32 1, %s950_s25  ;;  %s111_s12 = sadd.s32 1, %s942_s23 }
  0x3d   : > { %s1315_s28 = smov (%p1068_p12, %s1300_s28), 0  ;;  %p118_p1 = scmp.ne.s32.totalorder %s942_s23, %s938_s22 }
  0x3e   : > { %s108_s10 = ssub.s32 %s950_s25, %s1315_s28  ;;  %p119_p4 = scmp.eq.s32.totalorder %s954_s26, 0 }
  0x3f   : > { %p109_p6 = scmp.eq.s32.totalorder %s108_s10, 0  ;;  %p1130_p8 = por %p1034_p2, %p118_p1 }
  0x40   : > { %p120_p9 = por %p119_p4, %p118_p1  ;;  %p731_p0 = scmp.lt.s32.totalorder %s954_s26, 2 }
  0x41   : > { %s1136_s16 = scalar_select %p109_p6, %s942_s23, %s111_s12  }
  0x42   : > { %s255_s11 = sand.u32 1, %s942_s23   ;;  %s697_s18 = smul.u32 48, %s950_s25 }
  0x43   : > { %s696_s14 = smul.u32 3, %s255_s11  ;;  %p1140_p11 = pnand %p731_p0, %p120_p9 }
  0x44   : > { %s1147_s30 = scalar_lea.hbm %s1280_s3, %s697_s18  ;;  %s256_s13 = scalar_lea.sflag [#allocation8], %s255_s11 }
  0x45   : > { %s259_s27 = scalar_lea.vmem [#allocation7], %s696_s14  ;;  %s834_s12 = scalar_lea.hbm %s1147_s30, 48 }
  0x46   : > { %s267_s8 = sshll.u32 %s259_s27, 4  ;;  %p835_p2 = scmp.ne.s32.totalorder %s1147_s30, %s834_s12  ;;  %s1149_s8 = int_to_ptr.vmem [resolvable:$true] %s267_s8 }
  0x47   : > { %p836_p12 = pneg %p1140_p11  ;;  %s839_s17 = scalar_lea.hbm %s1280_s3, 96 }
  0x48   : > { %p840_p10 = scmp.lt.u32.totalorder %s1147_s30, %s1280_s3  ;;  %p841_p13 = scmp.lt.u32.totalorder %s839_s17, %s834_s12 }
  0x49   : > { %p837_p5 = pnand %p836_p12, %p835_p2  ;;  %p843_p1 = scmp.lt.u32.totalorder %s834_s12, %s1147_s30 }
  0x4a   : > { %p842_p3 = por %p841_p13, %p840_p10 }
  0x4b   : > { %p838_p7 = pneg %p837_p5 }
  0x4c   : > { %p844_p4 = por %p843_p1, %p842_p3 }
  0x4e   : > { %p845_p6 = pnand %p844_p4, %p838_p7 }
  0x50   : > { %848 = shalt.err (!%p845_p6)
}
  0x51   : > { %s849_s11 = scalar_lea.vmem %s1149_s8, 48  ;;  %s958_s14 = smov [#allocation7]  }
  0x52   : > { %p850_p9 = scmp.ne.s32.totalorder %s1149_s8, %s849_s11  ;;  %s854_s27 = sshll.u32 %s958_s14, 4  ;;  %s855_s27 = int_to_ptr.vmem [resolvable:$false] %s854_s27 }
  0x53   : > { %s856_s0 = scalar_lea.vmem %s855_s27, 96  ;;  %p857_p5 = scmp.lt.s32.totalorder %s1149_s8, %s855_s27 }
  0x54   : > { %p852_p0 = pnand %p850_p9, %p836_p12  ;;  %p858_p10 = scmp.lt.s32.totalorder %s856_s0, %s849_s11 }
  0x56   : > { %p853_p2 = pneg %p852_p0  ;;  %p859_p13 = por %p858_p10, %p857_p5 }
  0x58   : > { %p860_p3 = pnand %p859_p13, %p853_p2 }
  0x5a   : > { %863 = shalt.err (!%p860_p3)
}
  0x5b   : > { %724 = dma.hbm_to_vmem [thread:$0]  (!%p1140_p11), %s1147_s30, 48, %s1149_s8, %s256_s13  }
  0x5c   : > { %p1303_p7 = scmp.ne.s32.totalorder %s1296_s9, 0 }
  0x5d   : > { %p1304_p12 = scmp.ne.s32.totalorder (!%p1303_p7), %s1291_s29, 0 }
  0x5e   : > { %290 = sbr.rel (%p1303_p7) target bundleno = 166 (0xa6), region = 44 }
  0x65   : > { %917 = dma.done.wait (%p1304_p12), [#allocation5], 16  }
  0x66   : > { %919 = vsyncadd (%p1304_p12), [#allocation5], 4294967280 }
  0x67   : > { %921 = dma.done.wait (%p1304_p12), [#allocation3], 96  }
  0x68   : > { %923 = vsyncadd (%p1304_p12), [#allocation3], 4294967200  ;;  %s1187_s19 = sand.u32 1, %s938_s22   ;;  %p1305_p11 = scmp.ne.s32.totalorder %s1293_s7, 0 }
  0x69   : > { %s698_s9 = smul.u32 3, %s1187_s19  ;;  %s301_s30 = scalar_lea.sflag [#allocation8], %s1187_s19 }
  0x6b   : > { %s1191_s8 = scalar_lea.vmem [#allocation7], %s698_s9 }
  0x6c   : > { %925 = dma.done.wait (%p1305_p11), %s301_s30, 48  }
  0x6d   : > { %927 = vsyncadd (%p1305_p11), %s301_s30, 4294967248 }
  0x6e   : > { %309 = sfence }
  0x6f   : > { %p346_p1 = scmp.lt.s32.totalorder %s946_s24, 1  ;;  %v371_v0 = vlaneseq  ;;  %s692_s29 = sshll.u32 %s946_s24, 1  ;;  %v959_v2 = vmov 1983009808   ;;  %v362_v5 = vld [vmem:[#allocation6] sm:$0x3f] }
  0x70   : > { %s359_s13 = sld [smem:[#allocation2 + %s692_s29]]  ;;  %v389_v3 = vunpack.c.l.s4 %v959_v2  ;;  %s360_s10 = sadd.s32 1, %s692_s29  ;;  %v387_v10 = vcombine.high %v362_v5, %v362_v5  ;;  %v367_v35 = vld [vmem:[%s1191_s8] sm:$0x7] }
  0x71   : > { %v372_v1 = vshrl.u32 %v371_v0, 7  ;;  %s347_s12 = scalar_select %p346_p1, %s946_s24, 1 }
  0x72   : > { %v390_v4 = vunpack.c.0.s8 %v389_v3  ;;  %s361_s7 = sld [smem:[#allocation2 + %s360_s10]]  ;;  %s699_s8 = smul.u32 6, %s1187_s19 }
  0x73   : > { %s1200_s18 = smul.u32 3, %s347_s12  ;;  %v373_v6 = vsub.s32 0, %v372_v1  ;;  %v377_v8 = vsub.s32 1, %v372_v1  ;;  %v381_v9 = vsub.s32 2, %v372_v1  ;;  %s525_s20 = scalar_lea.sflag [#allocation4], %s1187_s19 }
  0x74   : > { %v1202_v7 = vsub.s32 %v390_v4, %v372_v1  ;;  %s345_s12 = scalar_lea.vmem [#allocation9], %s699_s8 }
  0x75   : > { %s353_s11 = scalar_lea.vmem %s1281_s4, %s1200_s18  ;;  %s357_s0 = scalar_lea.vmem %s1282_s5, %s1200_s18  ;;  %v374_v42 = vrot.slane %v367_v35, %v373_v6  ;;  %v378_v46 = vrot.slane %v367_v35, %v377_v8  ;;  %v382_v47 = vrot.slane %v367_v35, %v381_v9 }
  0x76   : > { %v394_v11 = vrot.slane %v362_v5, %v1202_v7  ;;  %v369_v12 = vld [vmem:[%s357_s0] sm:$0x7]  ;;  %v466_v15 = vstv %s359_s13  ;;  %v401_v16 = vrot.slane %v387_v10, %v1202_v7  ;;  %s349_s29 = scalar_lea.vmem %s1279_s2, %s1200_s18  ;;  %s701_s13 = smul.u32 96, %s946_s24 }
  0x77   : > { %v368_v13 = vld [vmem:[%s353_s11] sm:$0x7]  ;;  %v432_v14 = vrot.slane %v369_v12, %v373_v6  ;;  %v436_v18 = vrot.slane %v369_v12, %v377_v8  ;;  %v440_v19 = vrot.slane %v369_v12, %v381_v9  ;;  %v467_v22 = vmul.f32 %v466_v15, %v362_v5  ;;  %s541_s10 = sshll.u32 %s345_s12, 4  ;;  %s960_s11 = smov [#allocation9]   ;;  %s1225_s10 = int_to_ptr.vmem [resolvable:$true] %s541_s10 }
  0x78   : > { %v402_v17 = vcombine.high %v394_v11, %v394_v11  ;;  %v451_v21 = vrot.slane %v368_v13, %v373_v6  ;;  %v468_v23 = vstv %s361_s7  ;;  %v455_v24 = vrot.slane %v368_v13, %v377_v8  ;;  %v366_v43 = vld [vmem:[%s349_s29] sm:$0x7]  ;;  %s1230_s17 = scalar_lea.hbm %s1283_s6, %s701_s13  ;;  %s864_s24 = scalar_lea.vmem %s1225_s10, 96 }
  0x79   : > { %v444_v20 = vmul.f32 %v432_v14, %v394_v11  ;;  %v446_v26 = vmul.f32 %v440_v19, %v401_v16  ;;  %v459_v27 = vrot.slane %v368_v13, %v381_v9  ;;  %v469_v28 = vadd.f32 %v468_v23, %v467_v22  ;;  %p865_p4 = scmp.ne.s32.totalorder %s1225_s10, %s864_s24  ;;  %s868_s14 = sshll.u32 %s960_s11, 4  ;;  %s869_s14 = int_to_ptr.vmem [resolvable:$false] %s868_s14 }
  0x7a   : > { %v445_v25 = vmul.f32 %v436_v18, %v402_v17  ;;  %v406_v48 = vmul.f32 %v394_v11, %v374_v42  ;;  %v413_v49 = vrot.slane %v366_v43, %v373_v6  ;;  %v407_v50 = vmul.f32 %v402_v17, %v378_v46  ;;  %s870_s27 = scalar_lea.vmem %s869_s14, 192  ;;  %p871_p0 = scmp.lt.s32.totalorder %s1225_s10, %s869_s14 }
  0x7b   : > { %v463_v29 = vadd.f32 %v451_v21, %v444_v20  ;;  %v470_v30 = vmul.f32 %v469_v28, %v362_v5  ;;  %v465_v32 = vadd.f32 %v459_v27, %v446_v26  ;;  %v417_v51 = vrot.slane %v366_v43, %v377_v8  ;;  %p866_p6 = pnand %p865_p4, %p1130_p8  ;;  %p872_p2 = scmp.lt.s32.totalorder %s870_s27, %s864_s24 }
  0x7c   : > { %v464_v31 = vadd.f32 %v455_v24, %v445_v25  ;;  %v408_v52 = vmul.f32 %v401_v16, %v382_v47  ;;  %v421_v53 = vrot.slane %v366_v43, %v381_v9  ;;  %v425_v54 = vadd.f32 %v413_v49, %v406_v48 }
  0x7d   : > { %v472_v33 = vcombine.high %v470_v30, %v470_v30  ;;  %v479_v34 = vrot.slane %v470_v30, %v1202_v7  ;;  %v426_v55 = vadd.f32 %v417_v51, %v407_v50  ;;  %p867_p9 = pneg %p866_p6  ;;  %p873_p5 = por %p872_p2, %p871_p0 }
  0x7e   : > { %v427_v57 = vadd.f32 %v421_v53, %v408_v52 }
  0x7f   : > { %v486_v36 = vrot.slane %v472_v33, %v1202_v7  ;;  %v487_v37 = vcombine.high %v479_v34, %v479_v34  ;;  %v491_v38 = vadd.f32 %v479_v34, %v463_v29  ;;  %p874_p10 = pnand %p873_p5, %p867_p9 }
  0x81   : > { %v492_v39 = vadd.f32 %v487_v37, %v464_v31  ;;  %v493_v40 = vadd.f32 %v486_v36, %v465_v32  ;;  %v494_v41 = vmax.f32 %v491_v38, 1e-24 }
  0x83   : > { %v495_v44 = vmax.f32 %v492_v39, 1e-24  ;;  %v496_v45 = vmax.f32 %v493_v40, 1e-24  ;;  %787 = vrsqrt.f32 %v494_v41 }
  0x85   : > { %789 = vrsqrt.f32 %v495_v44 }
  0x86   : > { %791 = vrsqrt.f32 %v496_v45 }
  0x8d   : > { %v788_v56 = vpop.eup %787 }
  0x8e   : > { %v500_v58 = vmul.f32 %v788_v56, %v425_v54 }
  0x8f   : > { %v790_v59 = vpop.eup %789 }
  0x90   : > { %v792_v60 = vpop.eup %791  ;;  %v501_v61 = vmul.f32 %v790_v59, %v426_v55 }
  0x91   : > { %v502_v62 = vmul.f32 %v792_v60, %v427_v57 }
  0x92   : > { %v506_v63 = vcombine.low %v500_v58, %v501_v61 }
  0x93   : > { %v520_v0 = vrot.slane %v502_v62, %v1202_v7 }
  0x94   : > { %v513_v1 = vrot.slane %v506_v63, %v1202_v7 }
  0x96   : > { %v521_v2 = vcombine.low %v513_v1, %v520_v0 }
  0x98   : > { %523 = vst [vmem:[%s345_s12] sm:$0x3f] %v521_v2 }
  0x99   : > { %877 = shalt.err (!%p874_p10)
}
  0x9a   : > { %s878_s19 = scalar_lea.hbm %s1230_s17, 96  ;;  %s882_s30 = scalar_lea.hbm %s1283_s6, 192 }
  0x9b   : > { %p879_p13 = scmp.ne.s32.totalorder %s1230_s17, %s878_s19  ;;  %p883_p12 = scmp.lt.u32.totalorder %s1230_s17, %s1283_s6 }
  0x9c   : > { %p884_p11 = scmp.lt.u32.totalorder %s882_s30, %s878_s19  ;;  %p886_p4 = scmp.lt.u32.totalorder %s878_s19, %s1230_s17 }
  0x9d   : > { %p880_p3 = pnand %p879_p13, %p1130_p8 }
  0x9e   : > { %p885_p1 = por %p884_p11, %p883_p12 }
  0x9f   : > { %p881_p7 = pneg %p880_p3 }
  0xa0   : > { %p887_p6 = por %p886_p4, %p885_p1 }
  0xa2   : > { %p888_p9 = pnand %p887_p6, %p881_p7 }
  0xa4   : > { %891 = shalt.err (!%p888_p9)
}
  0xa5   : > { %712 = dma.vmem_to_hbm [thread:$0]  (%p1130_p8), %s1225_s10, 96, %s1230_s17, %s525_s20  }
  0xa6 PF: > { %s1306_s13 = sld [smem:[#allocation14_spill]]  ;;  %s553_s12 = sand.u32 1, %s934_s21  }
  0xa7   : > { %p1308_p2 = scmp.ge.s32.totalorder %s954_s26, 2  ;;  %s554_s18 = scalar_lea.sflag [#allocation4], %s553_s12 }
  0xac   : > { %p1307_p0 = scmp.ne.s32.totalorder %s1306_s13, 0 }
  0xae   : > { %p726_p5 = pnand %p1308_p2, %p1307_p0 }
  0xb0   : > { %929 = dma.done.wait (!%p726_p5), %s554_s18, 96  }
  0xb1   : > { %931 = vsyncadd (!%p726_p5), %s554_s18, 4294967200  ;;  %s24_s26 = sadd.s32 1, %s954_s26   ;;  %s1309_s21 = smov %s938_s22 }
  0xb2   : > { %p21_p10 = scmp.ge.s32.totalorder %s24_s26, 4   ;;  %s1310_s22 = smov %s942_s23 }
  0xb3   : > { %s1311_s23 = smov %s1136_s16  ;;  %s1312_s24 = smov %s950_s25 }
  0xb4   : > { %s1313_s25 = smov %s1315_s28  ;;  %23 = sbr.rel (!%p21_p10) target bundleno = 10 (0xa), region = 108 }
  0xbb   :  { %559 = vsyncpa [#allocation3], 1 }
  0xbc   :  { %561 = vsyncpa [#allocation3 + $0x1], 1 }
  0xbd   :  { %562 = vsyncpa [#allocation8], 1 }
  0xbe   :  { %564 = vsyncpa [#allocation8 + $0x1], 1 }
  0xbf   :  { %565 = vsyncpa [#allocation4], 1 }
  0xc0   :  { %567 = vsyncpa [#allocation4 + $0x1], 1 }
  0xc1   :  { %568 = vsyncpa [#allocation5], 1 }
  0xc2   :  { %570 = vsyncpa [#allocation5 + $0x1], 1 }

</bundles_post_ra>
